<compile_context>
chip_gen: v7x
topology: tpu7x:2x2x1
jax: 0.10.0
libtpu: 0.0.40
codegen_flags: <defaults>
</compile_context>

<pallas_src>
import functools

import jax
import jax.numpy as jnp
from jax.experimental import pallas as pl
from jax.experimental.pallas import tpu as pltpu

_LANE = 128
_SUBLANE = 8


def _round_up(n, m):
    return ((n + m - 1) // m) * m


def _pad2(a, rows, cols):
    return jnp.pad(a, ((0, rows - a.shape[0]), (0, cols - a.shape[1])))


def _dlrmvn_kernel(x_ref, wbb_ref, bbb_ref, whd_ref, bhd_ref, out_ref,
                   *, out_dim, matmul_dtype):
    # backbone: Linear(D_in -> H) + ReLU   (MXU matmul, f32 accumulate; VPU elementwise in f32)
    x = x_ref[...].astype(matmul_dtype)
    h = jnp.dot(x, wbb_ref[...].astype(matmul_dtype),
                preferred_element_type=jnp.float32)
    h = jnp.maximum(h + bbb_ref[...], 0.0)

    # fused heads: Linear(H -> [out_dim | out_dim | out_dim*rank] padded to 128k lanes)
    slab = jnp.dot(h.astype(matmul_dtype), whd_ref[...].astype(matmul_dtype),
                   preferred_element_type=jnp.float32) + bhd_ref[...]

    # Apply exp only to the logdiag columns [out_dim, 2*out_dim) (EUP exp + VPU select;
    # keeps the store a single unmasked lane-dense write).
    col = jax.lax.broadcasted_iota(jnp.int32, slab.shape, 1)
    is_diag = (col >= out_dim) & (col < 2 * out_dim)
    out_ref[...] = jnp.where(is_diag, jnp.exp(slab), slab).astype(out_ref.dtype)


def deep_lowrank_mvn_forward(x, w_bb, b_bb, w_mean, b_mean, w_logdiag, b_logdiag,
                             w_factor, b_factor, *, rank, tb=256,
                             matmul_dtype=jnp.float32):
    """Fused backbone + (mean, logdiag->exp, factor) heads.

    Returns (mean [B, out_dim], diag [B, out_dim], factors [B, out_dim, rank]).
    Weights are [in, out] (transposed vs PyTorch); biases are [1, out].
    """
    B, D_in = x.shape
    H = w_bb.shape[1]
    out_dim = w_mean.shape[1]
    assert w_logdiag.shape[1] == out_dim
    assert w_factor.shape[1] == out_dim * rank

    # ---- fuse the three heads into one lane-dense slab: [mean | logdiag | factor] ----
    w_head = jnp.concatenate([w_mean, w_logdiag, w_factor], axis=1)   # (H, W)
    b_head = jnp.concatenate([b_mean, b_logdiag, b_factor], axis=1)   # (1, W)
    W = w_head.shape[1]

    # ---- pad lane dims to 128 multiples, batch to sublane / tile multiple ----
    d_in_p = _round_up(D_in, _LANE)
    h_p = _round_up(H, _LANE)
    w_p = _round_up(W, _LANE)
    tb = _round_up(tb, _SUBLANE)

    b_p = _round_up(B, _SUBLANE)
    use_grid = b_p > tb
    if use_grid:
        b_p = _round_up(B, tb)
    num_tiles = b_p // tb if use_grid else 1

    x_p = _pad2(x, b_p, d_in_p)
    w_bb_p = _pad2(w_bb, d_in_p, h_p)
    b_bb_p = _pad2(b_bb, 1, h_p)
    w_head_p = _pad2(w_head, h_p, w_p)
    b_head_p = _pad2(b_head, 1, w_p)

    kernel = functools.partial(_dlrmvn_kernel, out_dim=out_dim,
                               matmul_dtype=matmul_dtype)

    cost = pl.CostEstimate(
        flops=2 * b_p * (d_in_p * h_p + h_p * w_p),
        transcendentals=b_p * w_p,
        bytes_accessed=4 * (b_p * d_in_p + d_in_p * h_p + h_p
                            + h_p * w_p + w_p + b_p * w_p),
    )

    out_shape = jax.ShapeDtypeStruct((b_p, w_p), jnp.float32)

    if not use_grid:
        # Small problem: grid-less call, everything resident in VMEM, no per-step
        # grid machinery, single unmasked lane-dense output store.
        slab = pl.pallas_call(
            kernel,
            out_shape=out_shape,
            in_specs=[pl.BlockSpec(memory_space=pltpu.MemorySpace.VMEM)] * 5,
            out_specs=pl.BlockSpec(memory_space=pltpu.MemorySpace.VMEM),
            cost_estimate=cost,
        )(x_p, w_bb_p, b_bb_p, w_head_p, b_head_p)
    else:
        # Realistic batch: tile B with a "parallel" grid axis; weights/biases stay
        # resident (index_map -> (0, 0)); x / out tiles are double-buffered.
        slab = pl.pallas_call(
            kernel,
            out_shape=out_shape,
            grid=(num_tiles,),
            in_specs=[
                pl.BlockSpec((tb, d_in_p), lambda i: (i, 0)),
                pl.BlockSpec((d_in_p, h_p), lambda i: (0, 0)),
                pl.BlockSpec((1, h_p), lambda i: (0, 0)),
                pl.BlockSpec((h_p, w_p), lambda i: (0, 0)),
                pl.BlockSpec((1, w_p), lambda i: (0, 0)),
            ],
            out_specs=pl.BlockSpec((tb, w_p), lambda i: (i, 0)),
            compiler_params=pltpu.CompilerParams(
                dimension_semantics=("parallel",)),
            cost_estimate=cost,
        )(x_p, w_bb_p, b_bb_p, w_head_p, b_head_p)

    # ---- split the fused slab back into the module's three outputs ----
    mean = slab[:B, :out_dim]
    diag = slab[:B, out_dim:2 * out_dim]
    factors = slab[:B, 2 * out_dim:2 * out_dim + out_dim * rank].reshape(
        B, out_dim, rank)
    return mean, diag, factors


def _reference(x, w_bb, b_bb, w_mean, b_mean, w_logdiag, b_logdiag,
               w_factor, b_factor, rank):
    h = jnp.maximum(x @ w_bb + b_bb, 0.0)
    mean = h @ w_mean + b_mean
    diag = jnp.exp(h @ w_logdiag + b_logdiag)
    factors = (h @ w_factor + b_factor).reshape(x.shape[0], w_mean.shape[1], rank)
    return mean, diag, factors


if __name__ == "__main__":
    # Small shapes consistent with the module: backbone = Linear(32 -> 32) + ReLU,
    # hidden_dim=32, out_dim=16, rank=4.
    # TODO(synk): the original `backbone` is an arbitrary nn.Module; a Linear+ReLU
    # stand-in is used here.
    D_in, H, OUT, RANK = 32, 32, 16, 4

    key = jax.random.PRNGKey(0)
    ks = jax.random.split(key, 10)
    w_bb = jax.random.normal(ks[0], (D_in, H), jnp.float32) * 0.1
    b_bb = jax.random.normal(ks[1], (1, H), jnp.float32) * 0.1
    w_mean = jax.random.normal(ks[2], (H, OUT), jnp.float32) * 0.1
    b_mean = jax.random.normal(ks[3], (1, OUT), jnp.float32) * 0.1
    w_logdiag = jax.random.normal(ks[4], (H, OUT), jnp.float32) * 0.1
    b_logdiag = jax.random.normal(ks[5], (1, OUT), jnp.float32) * 0.1
    w_factor = jax.random.normal(ks[6], (H, OUT * RANK), jnp.float32) * 0.1
    b_factor = jax.random.normal(ks[7], (1, OUT * RANK), jnp.float32) * 0.1

    params = (w_bb, b_bb, w_mean, b_mean, w_logdiag, b_logdiag, w_factor, b_factor)

    # 1) tiny batch -> grid-less path
    x_small = jax.random.normal(ks[8], (8, D_in), jnp.float32)
    mean, diag, factors = deep_lowrank_mvn_forward(x_small, *params, rank=RANK)
    jax.block_until_ready((mean, diag, factors))
    m_ref, d_ref, f_ref = _reference(x_small, *params, RANK)
    assert jnp.allclose(mean, m_ref, atol=1e-5, rtol=1e-5)
    assert jnp.allclose(diag, d_ref, atol=1e-5, rtol=1e-5)
    assert jnp.allclose(factors, f_ref, atol=1e-5, rtol=1e-5)

    # 2) larger batch with a small tile -> exercises the "parallel" batch-tiled path
    x_big = jax.random.normal(ks[9], (40, D_in), jnp.float32)
    mean2, diag2, factors2 = deep_lowrank_mvn_forward(x_big, *params, rank=RANK, tb=8)
    jax.block_until_ready((mean2, diag2, factors2))
    m_ref2, d_ref2, f_ref2 = _reference(x_big, *params, RANK)
    assert jnp.allclose(mean2, m_ref2, atol=1e-5, rtol=1e-5)
    assert jnp.allclose(diag2, d_ref2, atol=1e-5, rtol=1e-5)
    assert jnp.allclose(factors2, f_ref2, atol=1e-5, rtol=1e-5)

    print("KERNEL_OK")
</pallas_src>

<mosaic_0001>
module attributes {stable_mosaic.version = 11 : i64} {
  func.func @_dlrmvn_kernel(%arg0: memref<8x128xf32, #tpu.memory_space<vmem>>, %arg1: memref<128x128xf32, #tpu.memory_space<vmem>>, %arg2: memref<1x128xf32, #tpu.memory_space<vmem>>, %arg3: memref<128x128xf32, #tpu.memory_space<vmem>>, %arg4: memref<1x128xf32, #tpu.memory_space<vmem>>, %arg5: memref<8x128xf32, #tpu.memory_space<vmem>>) attributes {dimension_semantics = [], scalar_prefetch = 0 : i64, scratch_operands = 0 : i64, tpu.core_type = #tpu.core_type<tc>} {
    %c0 = arith.constant 0 : index
    %c0_0 = arith.constant 0 : index
    %0 = vector.load %arg0[%c0, %c0_0] : memref<8x128xf32, #tpu.memory_space<vmem>>, vector<8x128xf32>
    %c0_1 = arith.constant 0 : index
    %c0_2 = arith.constant 0 : index
    %1 = vector.load %arg1[%c0_1, %c0_2] : memref<128x128xf32, #tpu.memory_space<vmem>>, vector<128x128xf32>
    %cst = arith.constant dense<0.000000e+00> : vector<8x128xf32>
    %2 = tpu.matmul %0, %1, %cst {dimension_numbers = #tpu.dot_dimension_numbers<[1], [0], [0], [1], [0, 0, 1, 1], [], []>} : vector<8x128xf32>, vector<128x128xf32>, vector<8x128xf32> -> vector<8x128xf32>
    %c0_3 = arith.constant 0 : index
    %c0_4 = arith.constant 0 : index
    %3 = vector.load %arg2[%c0_3, %c0_4] : memref<1x128xf32, #tpu.memory_space<vmem>>, vector<1x128xf32>
    %4 = vector.broadcast %3 : vector<1x128xf32> to vector<8x128xf32>
    %5 = arith.addf %2, %4 : vector<8x128xf32>
    %cst_5 = arith.constant 0.000000e+00 : f32
    %6 = vector.broadcast %cst_5 : f32 to vector<8x128xf32>
    %7 = arith.maximumf %5, %6 : vector<8x128xf32>
    %c0_6 = arith.constant 0 : index
    %c0_7 = arith.constant 0 : index
    %8 = vector.load %arg3[%c0_6, %c0_7] : memref<128x128xf32, #tpu.memory_space<vmem>>, vector<128x128xf32>
    %cst_8 = arith.constant dense<0.000000e+00> : vector<8x128xf32>
    %9 = tpu.matmul %7, %8, %cst_8 {dimension_numbers = #tpu.dot_dimension_numbers<[1], [0], [0], [1], [0, 0, 1, 1], [], []>} : vector<8x128xf32>, vector<128x128xf32>, vector<8x128xf32> -> vector<8x128xf32>
    %c0_9 = arith.constant 0 : index
    %c0_10 = arith.constant 0 : index
    %10 = vector.load %arg4[%c0_9, %c0_10] : memref<1x128xf32, #tpu.memory_space<vmem>>, vector<1x128xf32>
    %11 = vector.broadcast %10 : vector<1x128xf32> to vector<8x128xf32>
    %12 = arith.addf %9, %11 : vector<8x128xf32>
    %13 = tpu.iota {dimensions = array<i32: 1>} : vector<8x128xi32>
    %c16_i32 = arith.constant 16 : i32
    %14 = vector.broadcast %c16_i32 : i32 to vector<8x128xi32>
    %15 = arith.cmpi sge, %13, %14 : vector<8x128xi32>
    %c32_i32 = arith.constant 32 : i32
    %16 = vector.broadcast %c32_i32 : i32 to vector<8x128xi32>
    %17 = arith.cmpi slt, %13, %16 : vector<8x128xi32>
    %18 = arith.andi %15, %17 : vector<8x128xi1>
    %19 = math.exp %12 : vector<8x128xf32>
    %20 = arith.select %18, %19, %12 : vector<8x128xi1>, vector<8x128xf32>
    %c0_11 = arith.constant 0 : index
    %c0_12 = arith.constant 0 : index
    %21 = vector.load %arg5[%c0_11, %c0_12] : memref<8x128xf32, #tpu.memory_space<vmem>>, vector<8x128xf32>
    tpu.vector_store %arg5[%c0_11, %c0_12], %20 {strides = array<i32>} : memref<8x128xf32, #tpu.memory_space<vmem>>, vector<8x128xf32>,
    return
  }
}

</mosaic_0001>

<bundles_post_ra>
// kernel: tpu_custom_call.1
= control target key start
LH: loop header
LB: loop body
LE: loop exit
PB: predicated region body
PF: predicated region fallthrough
CT: control target
= control target key end

     0   :  { %10 = vsyncpa [#allocation3], 0  ;;  %s647_s0 = inlined_call_operand.hbm [shape: f32[8,128], index: 0, kind: input, shape index: {}]   ;;  %s648_s1 = inlined_call_operand.hbm [shape: f32[128,128], index: 1, kind: input, shape index: {}]   ;;  %s649_s2 = inlined_call_operand.vmem [shape: f32[1,128], index: 2, kind: input, shape index: {}]   ;;  %s650_s3 = inlined_call_operand.hbm [shape: f32[128,128], index: 3, kind: input, shape index: {}]   ;;  %s651_s4 = inlined_call_operand.vmem [shape: f32[1,128], index: 4, kind: input, shape index: {}]   ;;  %s652_s5 = inlined_call_operand.hbm [shape: f32[8,128], index: 5, kind: output, shape index: {}]  }
   0x1   :  { %11 = vsyncpa [#allocation6], 0 }
   0x2   :  { %12 = vsyncpa [#allocation4], 0  ;;  %s532_s18 = smov [#allocation5]   ;;  %s438_s22 = scalar_lea.hbm %s648_s1, 2048 }
   0x3   :  { %s28_s19 = sshll.u32 %s532_s18, 4  ;;  %p439_p0 = scmp.ne.s32.totalorder %s648_s1, %s438_s22  ;;  %s29_s19 = int_to_ptr.vmem [resolvable:$true] %s28_s19 }
   0x4   :  { %p442_p1 = scmp.lt.u32.totalorder %s438_s22, %s648_s1 }
   0x6   :  { %p444_p2 = pnand %p442_p1, %p439_p0 }
   0x8   :  { %447 = shalt.err (!%p444_p2)
}
   0x9   :  { %s448_s27 = scalar_lea.vmem %s29_s19, 2048  ;;  %p453_p4 = scmp.lt.s32.totalorder %s29_s19, %s29_s19 }
   0xa   :  { %p449_p3 = scmp.ne.s32.totalorder %s29_s19, %s448_s27  ;;  %p454_p5 = scmp.lt.s32.totalorder %s448_s27, %s448_s27 }
   0xc   :  { %p455_p6 = por %p454_p5, %p453_p4 }
   0xe   :  { %p456_p7 = pnand %p455_p6, %p449_p3 }
  0x10   :  { %459 = shalt.err (!%p456_p7)
}
  0x11   :  { %s533_s28 = smov 128   ;;  %s534_s29 = smov 8  }
  0x12   :  { %34 = dma.hbm_to_vmem [thread:$0]  %s648_s1, 2048, %s29_s19, [#allocation6], %s533_s28, %s533_s28, %s534_s29  }
  0x13   :  { %s535_s7 = smov [#allocation2]   ;;  %s536_s9 = smov [#allocation7]  }
  0x14   :  { %s19_s8 = sshll.u32 %s535_s7, 4  ;;  %s42_s10 = sshll.u32 %s536_s9, 4  ;;  %s20_s8 = int_to_ptr.vmem [resolvable:$true] %s19_s8  ;;  %s43_s10 = int_to_ptr.vmem [resolvable:$true] %s42_s10 }
  0x15   :  { %s460_s13 = scalar_lea.hbm %s647_s0, 128 }
  0x16   :  { %p461_p8 = scmp.ne.s32.totalorder %s647_s0, %s460_s13  ;;  %p464_p9 = scmp.lt.u32.totalorder %s460_s13, %s647_s0 }
  0x18   :  { %p466_p10 = pnand %p464_p9, %p461_p8 }
  0x1a   :  { %469 = shalt.err (!%p466_p10)
}
  0x1b   :  { %s470_s1 = scalar_lea.vmem %s20_s8, 128  ;;  %p475_p12 = scmp.lt.s32.totalorder %s20_s8, %s20_s8 }
  0x1c   :  { %p471_p11 = scmp.ne.s32.totalorder %s20_s8, %s470_s1  ;;  %p476_p13 = scmp.lt.s32.totalorder %s470_s1, %s470_s1 }
  0x1e   :  { %p477_p0 = por %p476_p13, %p475_p12 }
  0x20   :  { %p478_p1 = pnand %p477_p0, %p471_p11 }
  0x22   :  { %481 = shalt.err (!%p478_p1)
}
  0x23   :  { %22 = dma.hbm_to_vmem [thread:$0]  %s647_s0, 128, %s20_s8, [#allocation3]  }
  0x24   :  { %s482_s22 = scalar_lea.hbm %s650_s3, 2048 }
  0x25   :  { %p483_p2 = scmp.ne.s32.totalorder %s650_s3, %s482_s22  ;;  %p486_p3 = scmp.lt.u32.totalorder %s482_s22, %s650_s3 }
  0x27   :  { %p488_p4 = pnand %p486_p3, %p483_p2 }
  0x29   :  { %491 = shalt.err (!%p488_p4)
}
  0x2a   :  { %s492_s27 = scalar_lea.vmem %s43_s10, 2048  ;;  %p497_p6 = scmp.lt.s32.totalorder %s43_s10, %s43_s10 }
  0x2b   :  { %p493_p5 = scmp.ne.s32.totalorder %s43_s10, %s492_s27  ;;  %p498_p7 = scmp.lt.s32.totalorder %s492_s27, %s492_s27 }
  0x2d   :  { %p499_p8 = por %p498_p7, %p497_p6 }
  0x2f   :  { %p500_p9 = pnand %p499_p8, %p493_p5 }
  0x31   :  { %503 = shalt.err (!%p500_p9)
}
  0x32   :  { %48 = dma.hbm_to_vmem [thread:$0]  %s650_s3, 2048, %s43_s10, [#allocation6], %s533_s28, %s533_s28, %s534_s29  }
  0x33   :  { %526 = dma.done.wait [#allocation3], 128  }
  0x34   :  { %527 = vsyncadd [#allocation3], 4294967168 }
  0x35   :  { %528 = dma.done.wait [#allocation6], 4096  }
  0x36   :  { %529 = vsyncadd [#allocation6], 4294963200  ;;  %v537_v0 = vmov 0.0|0.0   ;;  %vm538_vm0 = vmmov 0   ;;  %v539_v1 = vmov 0.0   ;;  %v61_v2 = vld [vmem:[#allocation5] sm:$0xff]  ;;  %v248_v60 = vlaneseq }
  0x37   :  { %379 = vmatprep.subr.bf16.mxu0 %v537_v0  ;;  %341 = vmatprep.mubr.msk.f32.mxu0 %vm538_vm0, %v539_v1  ;;  %v62_v3 = vld [vmem:[#allocation5 + $0x8] sm:$0xff]  ;;  %v63_v4 = vld [vmem:[#allocation5 + $0x10] sm:$0xff]  ;;  %v64_v6 = vld [vmem:[#allocation5 + $0x18] sm:$0xff]  ;;  %s540_s7 = smov [#allocation8]  }
  0x38   :  { %403 = vmatprep.subr.bf16.mxu1 %v537_v0  ;;  %376 = vmatprep.mubr.msk.f32.mxu1 %vm538_vm0, %v539_v1  ;;  %v380_v5 = vpack.c.bf16 %v62_v3, %v61_v2  ;;  %v383_v7 = vpack.c.bf16 %v64_v6, %v63_v4  ;;  %v65_v8 = vld [vmem:[#allocation5 + $0x20] sm:$0xff]  ;;  %v66_v9 = vld [vmem:[#allocation5 + $0x28] sm:$0xff]  ;;  %v157_v12 = vld [vmem:[#allocation7 + $0x10] sm:$0xff]  ;;  %v249_v62 = vand.u32 127, %v248_v60 }
  0x39   :  { %v155_v10 = vld [vmem:[#allocation7] sm:$0xff]  ;;  %v156_v11 = vld [vmem:[#allocation7 + $0x8] sm:$0xff]  ;;  %v158_v13 = vld [vmem:[#allocation7 + $0x18] sm:$0xff]  ;;  %v386_v14 = vpack.c.bf16 %v66_v9, %v65_v8 }
  0x3a   :  { %381 = vmatpush3.bf16.msra.mxu0 %v380_v5  ;;  %v404_v15 = vpack.c.bf16 %v156_v11, %v155_v10  ;;  %v67_v16 = vld [vmem:[#allocation5 + $0x30] sm:$0xff]  ;;  %v68_v17 = vld [vmem:[#allocation5 + $0x38] sm:$0xff]  ;;  %v407_v18 = vpack.c.bf16 %v158_v13, %v157_v12  ;;  %v159_v19 = vld [vmem:[#allocation7 + $0x20] sm:$0xff]  ;;  %vm250_vm1 = vcmp.ge.s32.totalorder %v249_v62, 16  ;;  %vm251_vm2 = vcmp.lt.s32.totalorder %v249_v62, 32 }
  0x3b   :  { %382 = vmatprep.subr.bf16.mxu0 %v537_v0  ;;  %v160_v20 = vld [vmem:[#allocation7 + $0x28] sm:$0xff]  ;;  %v389_v21 = vpack.c.bf16 %v68_v17, %v67_v16  ;;  %v69_v22 = vld [vmem:[#allocation5 + $0x40] sm:$0xff]  ;;  %v161_v25 = vld [vmem:[#allocation7 + $0x30] sm:$0xff] }
  0x3c   :  { %405 = vmatpush3.bf16.msra.mxu1 %v404_v15  ;;  %v70_v23 = vld [vmem:[#allocation5 + $0x48] sm:$0xff]  ;;  %v410_v24 = vpack.c.bf16 %v160_v20, %v159_v19  ;;  %v162_v26 = vld [vmem:[#allocation7 + $0x38] sm:$0xff]  ;;  %v71_v28 = vld [vmem:[#allocation5 + $0x50] sm:$0xff] }
  0x3d   :  { %406 = vmatprep.subr.bf16.mxu1 %v537_v0  ;;  %v392_v27 = vpack.c.bf16 %v70_v23, %v69_v22  ;;  %v72_v29 = vld [vmem:[#allocation5 + $0x58] sm:$0xff]  ;;  %v413_v30 = vpack.c.bf16 %v162_v26, %v161_v25  ;;  %v163_v31 = vld [vmem:[#allocation7 + $0x40] sm:$0xff]  ;;  %v164_v32 = vld [vmem:[#allocation7 + $0x48] sm:$0xff] }
  0x3e   :  { %384 = vmatpush3.bf16.msra.mxu0 %v383_v7  ;;  %v395_v33 = vpack.c.bf16 %v72_v29, %v71_v28  ;;  %v73_v34 = vld [vmem:[#allocation5 + $0x60] sm:$0xff]  ;;  %v74_v35 = vld [vmem:[#allocation5 + $0x68] sm:$0xff]  ;;  %v416_v36 = vpack.c.bf16 %v164_v32, %v163_v31  ;;  %v165_v37 = vld [vmem:[#allocation7 + $0x50] sm:$0xff] }
  0x3f   :  { %385 = vmatprep.subr.bf16.mxu0 %v537_v0  ;;  %v166_v38 = vld [vmem:[#allocation7 + $0x58] sm:$0xff]  ;;  %v398_v39 = vpack.c.bf16 %v74_v35, %v73_v34  ;;  %v75_v40 = vld [vmem:[#allocation5 + $0x70] sm:$0xff]  ;;  %v167_v43 = vld [vmem:[#allocation7 + $0x60] sm:$0xff] }
  0x40   :  { %408 = vmatpush3.bf16.msra.mxu1 %v407_v18  ;;  %v76_v41 = vld [vmem:[#allocation5 + $0x78] sm:$0xff]  ;;  %v419_v42 = vpack.c.bf16 %v166_v38, %v165_v37  ;;  %v168_v44 = vld [vmem:[#allocation7 + $0x68] sm:$0xff]  ;;  %v169_v48 = vld [vmem:[#allocation7 + $0x70] sm:$0xff] }
  0x41   :  { %409 = vmatprep.subr.bf16.mxu1 %v537_v0  ;;  %v401_v45 = vpack.c.bf16 %v76_v41, %v75_v40  ;;  %v422_v46 = vpack.c.bf16 %v168_v44, %v167_v43  ;;  %v60_v47 = vld [vmem:[#allocation2] sm:$0xff]  ;;  %vm252_vm3 = vmand %vm250_vm1, %vm251_vm2 }
  0x42   :  { %387 = vmatpush3.bf16.msra.mxu0 %v386_v14  ;;  %v170_v49 = vld [vmem:[#allocation7 + $0x78] sm:$0xff] }
  0x43   :  { %388 = vmatprep.subr.bf16.mxu0 %v537_v0  ;;  %v425_v50 = vpack.c.bf16 %v170_v49, %v169_v48  ;;  %v273_v51 = vld [vmem:[%s649_s2] ss:$0 sm:$0xff]  ;;  %s263_s2 = sshll.u32 %s540_s7, 4  ;;  %s264_s2 = int_to_ptr.vmem [resolvable:$true] %s263_s2 }
  0x44   :  { %411 = vmatpush3.bf16.msra.mxu1 %v410_v24  ;;  %v274_v56 = vld [vmem:[%s651_s4] ss:$0 sm:$0xff]  ;;  %s504_s8 = scalar_lea.vmem %s264_s2, 128  ;;  %p509_p11 = scmp.lt.s32.totalorder %s264_s2, %s264_s2 }
  0x45   :  { %412 = vmatprep.subr.bf16.mxu1 %v537_v0  ;;  %p505_p10 = scmp.ne.s32.totalorder %s264_s2, %s504_s8  ;;  %p510_p12 = scmp.lt.s32.totalorder %s504_s8, %s504_s8 }
  0x46   :  { %390 = vmatpush3.bf16.msra.mxu0 %v389_v21 }
  0x47   :  { %391 = vmatprep.subr.bf16.mxu0 %v537_v0  ;;  %p511_p13 = por %p510_p12, %p509_p11 }
  0x48   :  { %414 = vmatpush3.bf16.msra.mxu1 %v413_v30 }
  0x49   :  { %415 = vmatprep.subr.bf16.mxu1 %v537_v0  ;;  %p512_p0 = pnand %p511_p13, %p505_p10 }
  0x4a   :  { %393 = vmatpush3.bf16.msra.mxu0 %v392_v27 }
  0x4b   :  { %394 = vmatprep.subr.bf16.mxu0 %v537_v0 }
  0x4c   :  { %417 = vmatpush3.bf16.msra.mxu1 %v416_v36 }
  0x4d   :  { %418 = vmatprep.subr.bf16.mxu1 %v537_v0 }
  0x4e   :  { %396 = vmatpush3.bf16.msra.mxu0 %v395_v33 }
  0x4f   :  { %397 = vmatprep.subr.bf16.mxu0 %v537_v0 }
  0x50   :  { %420 = vmatpush3.bf16.msra.mxu1 %v419_v42 }
  0x51   :  { %421 = vmatprep.subr.bf16.mxu1 %v537_v0 }
  0x52   :  { %399 = vmatpush3.bf16.msra.mxu0 %v398_v39 }
  0x53   :  { %400 = vmatprep.subr.bf16.mxu0 %v537_v0 }
  0x54   :  { %423 = vmatpush3.bf16.msra.mxu1 %v422_v46 }
  0x55   :  { %424 = vmatprep.subr.bf16.mxu1 %v537_v0 }
  0x56   :  { %402 = vmatpush3.bf16.msra.mxu0 %v401_v45 }
  0x58   :  { %426 = vmatpush3.bf16.msra.mxu1 %v425_v50 }
  0x59   :  { %342 = vmatmul.mubr.f32.vlgmr.msra.gmra.mrb[0].mxu0 %v60_v47 }
 0x12c   :  { %v150_v52 = vpop.f32.mrb[0].mxu0 }
 0x12d   :  { %v151_v53 = vadd.f32 %v273_v51, %v150_v52  ;;  %v343_v54 = vpop.f32.mrb[1].mxu0 }
 0x12f   :  { %v154_v55 = vmax.f32 %v151_v53, 0.0 }
 0x131   :  { %377 = vmatmul.mubr.f32.vlgmr.msra.gmra.mrb[0].mxu1 %v154_v55 }
 0x204   :  { %v244_v57 = vpop.f32.mrb[0].mxu1 }
 0x205   :  { %v245_v58 = vadd.f32 %v274_v56, %v244_v57  ;;  %v378_v59 = vpop.f32.mrb[1].mxu1 }
 0x207   :  { %v253_v61 = vmul.f32 1.442695, %v245_v58 }
 0x209   :  { %436 = vpow2.f32 %v253_v61 }
 0x213   :  { %v437_v63 = vpop.eup %436 }
 0x214   :  { %v255_v0 = vsel %vm252_vm3, %v437_v63, %v245_v58 }
 0x215   :  { %256 = vst [vmem:[#allocation8] sm:$0xff] %v255_v0 }
 0x216   :  { %515 = shalt.err (!%p512_p0)
}
 0x217   :  { %s516_s10 = scalar_lea.hbm %s652_s5, 128 }
 0x218   :  { %p517_p1 = scmp.ne.s32.totalorder %s652_s5, %s516_s10  ;;  %p520_p2 = scmp.lt.u32.totalorder %s516_s10, %s652_s5 }
 0x21a   :  { %p522_p3 = pnand %p520_p2, %p517_p1 }
 0x21c   :  { %525 = shalt.err (!%p522_p3)
}
 0x21d   :  { %266 = dma.vmem_to_hbm [thread:$0]  %s264_s2, 128, %s652_s5, [#allocation4]  }
 0x21e   :  { %530 = dma.done.wait [#allocation4], 128  }
 0x21f   :  { %531 = vsyncadd [#allocation4], 4294967168 }
 0x220   :  { %270 = vsyncpa [#allocation3], 1 }
 0x221   :  { %271 = vsyncpa [#allocation6], 1 }
 0x222   :  { %272 = vsyncpa [#allocation4], 1 }

</bundles_post_ra>
